<compile_context>
chip_gen: v6e
topology: v6e:2x2x1
jax: 0.10.0
libtpu: 0.0.40
codegen_flags: <defaults>
</compile_context>

<pallas_src>
import math

import jax
import jax.numpy as jnp
from jax import lax
from jax.experimental import pallas as pl
from jax.experimental.pallas import tpu as pltpu

EPS = 1e-5                    # torch.nn.GroupNorm default eps
SQRT2 = math.sqrt(2.0)


def _downsample_kernel(x_ref, w01_ref, w2_ref, p_ref, o_ref):
    # x_ref  : (TB, 2*C_in, L_out+1) phase planes [even(=tap0); odd(=tap1)], one
    #          extra lane column so tap2 (= even phase shifted by +1) is a
    #          contiguous in-VMEM slice (no roll / boundary mask needed).
    # w01_ref: (C_out, 2*C_in) = [ W[:,:,0] | W[:,:,1] ]
    # w2_ref : (C_out, C_in)   =   W[:,:,2]
    # p_ref  : (3, C_out, 1)   = [bias, 0.5*gamma, 0.5*beta]
    # o_ref  : (TB, C_out, L_out), L_out lane-dense (matches PyTorch NCL layout)
    tb, c_out, l_out = o_ref.shape
    c_in = w2_ref.shape[1]

    w01 = w01_ref[...]
    w2 = w2_ref[...]
    bias = p_ref[0]            # (C_out, 1) f32
    g_half = p_ref[1]          # 0.5 * gamma
    b_half = p_ref[2]          # 0.5 * beta
    inv_n = jnp.float32(1.0 / (c_out * l_out))

    for b in range(tb):        # static unroll; TB is VMEM-budgeted small (<= 8)
        xb = x_ref[b]                                   # (2*C_in, L_out+1)
        x01 = xb[:, :l_out]                             # taps k=0 (even) and k=1 (odd)
        x2 = xb[:c_in, 1:l_out + 1]                     # tap  k=2 (even phase, +1 shift)

        # --- strided Conv1d as two MXU contractions, f32 accumulation ---
        acc = (jnp.dot(w01, x01, preferred_element_type=jnp.float32)
               + jnp.dot(w2, x2, preferred_element_type=jnp.float32)
               + bias)                                  # (C_out, L_out) f32

        # --- GroupNorm(1, C_out): per-sample stats over all (C, L),
        #     two-pass (centered) variance for numerical robustness ---
        s1 = jnp.sum(jnp.sum(acc, axis=1, keepdims=True), axis=0, keepdims=True)
        mean = s1 * inv_n                               # (1, 1)
        d = acc - mean
        s2 = jnp.sum(jnp.sum(d * d, axis=1, keepdims=True), axis=0, keepdims=True)
        inv_std = lax.rsqrt(s2 * inv_n + EPS)           # (1, 1)

        # per-channel scale/shift (affine + GELU 0.5 factor folded in wrapper)
        h = d * (inv_std * g_half) + b_half             # = 0.5 * (norm*gamma + beta)

        # exact-erf GELU: gelu(z) = (z/2) * (1 + erf(z/sqrt(2))), with h = z/2
        y = h * (1.0 + lax.erf(h * jnp.float32(SQRT2)))

        # dropout = 0.0 -> identity
        o_ref[b] = y.astype(o_ref.dtype)


def _vmem_capacity_bytes():
    """Physical VMEM of the current generation (v7x: 64 MiB, v5e/v6e: 128 MiB)."""
    try:
        info = pltpu.get_tpu_info()
        cap = getattr(info, "vmem_capacity_bytes", None)
        if cap:
            return int(cap)
    except Exception:
        pass
    return 64 * 2**20          # conservative fallback (v7x per-TensorCore VMEM)


def _choose_batch_tile(batch, in_block_bytes, out_block_bytes, budget_bytes):
    """Largest divisor of `batch` whose double-buffered blocks fit the VMEM budget,
    capped at batch//2 so v7x's two TensorCores both get grid steps, and at 8 to
    bound the static unroll."""
    per_sample = 2 * (in_block_bytes + out_block_bytes)      # double-buffered in+out
    tb_vmem = max(int(budget_bytes // max(per_sample, 1)), 1)
    tb_core = max(batch // 2, 1) if batch >= 2 else 1
    tb_cap = min(tb_vmem, tb_core, 8)
    tb = 1
    for cand in range(1, batch + 1):
        if batch % cand == 0 and cand <= tb_cap:
            tb = cand
    return tb


def downsample_block(x, weight, bias, gamma, beta, *, stride=2, padding=None,
                     use_bf16_input=False):
    """x: [B, C_in, L] f32 -> [B, C_out, L_out] f32 (same NCL layout as PyTorch)."""
    B, C_in, L = x.shape
    C_out, C_in_w, K = weight.shape
    assert C_in_w == C_in
    if padding is None:
        padding = (K - 1) // 2                        # Conv1dBlock default (non-causal)
    assert K == 3 and stride == 2 and padding == 1, (
        "kernel is specialised to DownsampleBlock defaults (kernel_size=3, factor=2)")
    L_out = (L + 2 * padding - K) // stride + 1

    in_dtype = jnp.bfloat16 if use_bf16_input else jnp.float32

    # ---- glue: pure pad/slice/concat (fusion-friendly; allow_input_fusion lets
    #      XLA fold it into the kernel's input instead of a separate HBM copy) ----
    x_pad = jnp.pad(x, ((0, 0), (0, 0), (padding, padding)))
    # stride-2 phase planes (exactly the input data, no 1.5x tap duplication):
    #   even phase = padded idx 0,2,...,2*L_out   -> L_out+1 cols (taps k=0 and k=2)
    #   odd  phase = padded idx 1,3,...,2*L_out-1 -> L_out   cols (tap  k=1)
    even = lax.slice(x_pad, (0, 0, 0), (B, C_in, 2 * L_out + 1), (1, 1, 2))
    odd = lax.slice(x_pad, (0, 0, 1), (B, C_in, 2 * L_out), (1, 1, 2))
    odd = jnp.pad(odd, ((0, 0), (0, 0), (0, 1)))                  # align to L_out+1 cols
    x_phases = jnp.concatenate([even, odd], axis=1).astype(in_dtype)   # (B, 2*C_in, L_out+1)

    # weights regrouped for the two MXU contractions
    w01 = jnp.concatenate([weight[:, :, 0], weight[:, :, 1]], axis=1).astype(in_dtype)  # (C_out, 2*C_in)
    w2 = weight[:, :, 2].astype(in_dtype)                                               # (C_out, C_in)
    # [bias, 0.5*gamma, 0.5*beta]: GELU's leading 0.5 pre-folded into the affine
    params = jnp.stack([bias, 0.5 * gamma, 0.5 * beta],
                       axis=0).reshape(3, C_out, 1).astype(jnp.float32)

    # ---- generation-aware tiling ----
    cap = _vmem_capacity_bytes()                      # 64 MiB (v7x) / 128 MiB (v5e/v6e)
    vmem_limit = min(int(cap * 0.75), 100 * 2**20)    # raise default scoped limit (16/32 MiB)
    in_bytes = 2 * C_in * (L_out + 1) * jnp.dtype(in_dtype).itemsize
    out_bytes = C_out * L_out * 4
    TB = _choose_batch_tile(B, in_bytes, out_bytes, int(vmem_limit * 0.7))
    # TODO(synk): for L_out so long that even TB=1 overflows the VMEM budget, add an
    # "arbitrary" L_out grid axis (128-multiple lane blocks) with scratch-accumulated
    # GroupNorm stats and a finalize pass (two-phase normalisation).

    out = pl.pallas_call(
        _downsample_kernel,
        out_shape=jax.ShapeDtypeStruct((B, C_out, L_out), jnp.float32),
        grid=(B // TB,),
        in_specs=[
            pl.BlockSpec((TB, 2 * C_in, L_out + 1), lambda i: (i, 0, 0)),
            pl.BlockSpec((C_out, 2 * C_in), lambda i: (0, 0)),
            pl.BlockSpec((C_out, C_in), lambda i: (0, 0)),
            pl.BlockSpec((3, C_out, 1), lambda i: (0, 0, 0)),
        ],
        out_specs=pl.BlockSpec((TB, C_out, L_out), lambda i: (i, 0, 0)),
        compiler_params=pltpu.CompilerParams(
            dimension_semantics=("parallel",),
            vmem_limit_bytes=vmem_limit,
            allow_input_fusion=[True, False, False, False],
        ),
    )(x_phases, w01, w2, params)

    return out                                        # already NCL: (B, C_out, L_out)


def _reference(x, weight, bias, gamma, beta, stride, padding):
    """Pure-JAX reference matching the PyTorch forward."""
    y = lax.conv_general_dilated(
        x, weight, window_strides=(stride,), padding=[(padding, padding)],
        dimension_numbers=("NCH", "OIH", "NCH"),
        precision=lax.Precision.HIGHEST)
    y = y + bias[None, :, None]
    mean = jnp.mean(y, axis=(1, 2), keepdims=True)
    var = jnp.mean((y - mean) ** 2, axis=(1, 2), keepdims=True)
    y = (y - mean) / jnp.sqrt(var + EPS)
    y = y * gamma[None, :, None] + beta[None, :, None]
    return jax.nn.gelu(y, approximate=False)


if __name__ == "__main__":
    # module config (defaults): in=4, out=8, k=3, stride=2, padding=1,
    # normalization='layer' (GroupNorm(1, out)), activation='gelu', dropout=0
    B, C_in, L = 2, 4, 16
    C_out, K = 8, 3
    stride, padding = 2, 1

    key = jax.random.PRNGKey(0)
    kx, kw, kb, kg, kbe = jax.random.split(key, 5)

    x = jax.random.normal(kx, (B, C_in, L), dtype=jnp.float32)

    # kaiming_normal_(mode='fan_out', nonlinearity='relu'): std = sqrt(2 / (C_out*K))
    std = math.sqrt(2.0 / (C_out * K))
    weight = std * jax.random.normal(kw, (C_out, C_in, K), dtype=jnp.float32)
    # learnable params (perturbed from init so the affine path is exercised)
    bias = 0.1 * jax.random.normal(kb, (C_out,), dtype=jnp.float32)
    gamma = 1.0 + 0.1 * jax.random.normal(kg, (C_out,), dtype=jnp.float32)
    beta = 0.1 * jax.random.normal(kbe, (C_out,), dtype=jnp.float32)

    y = downsample_block(x, weight, bias, gamma, beta, stride=stride, padding=padding)
    y = jax.block_until_ready(y)

    assert y.shape == (B, C_out, L // 2), y.shape
    assert bool(jnp.all(jnp.isfinite(y)))

    y_ref = _reference(x, weight, bias, gamma, beta, stride, padding)
    err = float(jnp.max(jnp.abs(y - y_ref)))
    assert err < 1e-3, f"max abs error vs reference: {err}"

    print("KERNEL_OK")
</pallas_src>

<mosaic_0001>
module attributes {stable_mosaic.version = 11 : i64} {
  func.func @_downsample_kernel(%arg0: i32, %arg1: memref<1x8x9xf32, #tpu.memory_space<vmem>>, %arg2: memref<8x8xf32, #tpu.memory_space<vmem>>, %arg3: memref<8x4xf32, #tpu.memory_space<vmem>>, %arg4: memref<3x8x1xf32, #tpu.memory_space<vmem>>, %arg5: memref<1x8x8xf32, #tpu.memory_space<vmem>>) attributes {dimension_semantics = [#tpu.dimension_semantics<parallel>], iteration_bounds = array<i64: 2>, scalar_prefetch = 0 : i64, scratch_operands = 0 : i64, tpu.core_type = #tpu.core_type<tc>, window_params = [{transform_indices = @transform_0, window_bounds = array<i64: 1, 8, 9>}, {pipeline_mode = #tpu.pipeline_mode<synchronous>, transform_indices = @transform_1, window_bounds = array<i64: 8, 8>}, {pipeline_mode = #tpu.pipeline_mode<synchronous>, transform_indices = @transform_2, window_bounds = array<i64: 8, 4>}, {pipeline_mode = #tpu.pipeline_mode<synchronous>, transform_indices = @transform_3, window_bounds = array<i64: 3, 8, 1>}, {transform_indices = @transform_4, window_bounds = array<i64: 1, 8, 8>}]} {
    %c0 = arith.constant 0 : index
    %c0_0 = arith.constant 0 : index
    %0 = vector.load %arg2[%c0, %c0_0] : memref<8x8xf32, #tpu.memory_space<vmem>>, vector<8x8xf32>
    %c0_1 = arith.constant 0 : index
    %c0_2 = arith.constant 0 : index
    %1 = vector.load %arg3[%c0_1, %c0_2] : memref<8x4xf32, #tpu.memory_space<vmem>>, vector<8x4xf32>
    %c0_3 = arith.constant 0 : index
    %c0_4 = arith.constant 0 : index
    %c0_5 = arith.constant 0 : index
    %2 = vector.load %arg4[%c0_3, %c0_4, %c0_5] : memref<3x8x1xf32, #tpu.memory_space<vmem>>, vector<1x8x1xf32>
    %3 = vector.shape_cast %2 : vector<1x8x1xf32> to vector<8x1xf32>
    %c1 = arith.constant 1 : index
    %c0_6 = arith.constant 0 : index
    %c0_7 = arith.constant 0 : index
    %4 = vector.load %arg4[%c1, %c0_6, %c0_7] : memref<3x8x1xf32, #tpu.memory_space<vmem>>, vector<1x8x1xf32>
    %5 = vector.shape_cast %4 : vector<1x8x1xf32> to vector<8x1xf32>
    %c2 = arith.constant 2 : index
    %c0_8 = arith.constant 0 : index
    %c0_9 = arith.constant 0 : index
    %6 = vector.load %arg4[%c2, %c0_8, %c0_9] : memref<3x8x1xf32, #tpu.memory_space<vmem>>, vector<1x8x1xf32>
    %7 = vector.shape_cast %6 : vector<1x8x1xf32> to vector<8x1xf32>
    %c0_10 = arith.constant 0 : index
    %c0_11 = arith.constant 0 : index
    %c0_12 = arith.constant 0 : index
    %8 = vector.load %arg1[%c0_10, %c0_11, %c0_12] : memref<1x8x9xf32, #tpu.memory_space<vmem>>, vector<1x8x9xf32>
    %9 = vector.shape_cast %8 : vector<1x8x9xf32> to vector<8x9xf32>
    %10 = vector.extract_strided_slice %9 {offsets = [0, 0], sizes = [8, 8], strides = [1, 1]} : vector<8x9xf32> to vector<8x8xf32>
    %11 = vector.extract_strided_slice %9 {offsets = [0, 1], sizes = [4, 8], strides = [1, 1]} : vector<8x9xf32> to vector<4x8xf32>
    %cst = arith.constant dense<0.000000e+00> : vector<8x8xf32>
    %12 = tpu.matmul %0, %10, %cst {dimension_numbers = #tpu.dot_dimension_numbers<[1], [0], [0], [1], [0, 0, 1, 1], [], []>} : vector<8x8xf32>, vector<8x8xf32>, vector<8x8xf32> -> vector<8x8xf32>
    %cst_13 = arith.constant dense<0.000000e+00> : vector<8x8xf32>
    %13 = tpu.matmul %1, %11, %cst_13 {dimension_numbers = #tpu.dot_dimension_numbers<[1], [0], [0], [1], [0, 0, 1, 1], [], []>} : vector<8x4xf32>, vector<4x8xf32>, vector<8x8xf32> -> vector<8x8xf32>
    %14 = arith.addf %12, %13 : vector<8x8xf32>
    %15 = vector.broadcast %3 : vector<8x1xf32> to vector<8x8xf32>
    %16 = arith.addf %14, %15 : vector<8x8xf32>
    %cst_14 = arith.constant dense<0.000000e+00> : vector<8xf32>
    %17 = vector.multi_reduction <add>, %16, %cst_14 [1] : vector<8x8xf32> to vector<8xf32>
    %18 = vector.shape_cast %17 : vector<8xf32> to vector<8x1xf32>
    %cst_15 = arith.constant dense<0.000000e+00> : vector<1xf32>
    %19 = vector.multi_reduction <add>, %18, %cst_15 [0] : vector<8x1xf32> to vector<1xf32>
    %20 = vector.shape_cast %19 : vector<1xf32> to vector<1x1xf32>
    %cst_16 = arith.constant 1.562500e-02 : f32
    %21 = vector.broadcast %cst_16 : f32 to vector<1x1xf32>
    %22 = arith.mulf %20, %21 : vector<1x1xf32>
    %23 = vector.broadcast %22 : vector<1x1xf32> to vector<8x8xf32>
    %24 = arith.subf %16, %23 : vector<8x8xf32>
    %25 = arith.mulf %24, %24 : vector<8x8xf32>
    %cst_17 = arith.constant dense<0.000000e+00> : vector<8xf32>
    %26 = vector.multi_reduction <add>, %25, %cst_17 [1] : vector<8x8xf32> to vector<8xf32>
    %27 = vector.shape_cast %26 : vector<8xf32> to vector<8x1xf32>
    %cst_18 = arith.constant dense<0.000000e+00> : vector<1xf32>
    %28 = vector.multi_reduction <add>, %27, %cst_18 [0] : vector<8x1xf32> to vector<1xf32>
    %29 = vector.shape_cast %28 : vector<1xf32> to vector<1x1xf32>
    %cst_19 = arith.constant 1.562500e-02 : f32
    %30 = vector.broadcast %cst_19 : f32 to vector<1x1xf32>
    %31 = arith.mulf %29, %30 : vector<1x1xf32>
    %cst_20 = arith.constant 9.99999974E-6 : f32
    %32 = vector.broadcast %cst_20 : f32 to vector<1x1xf32>
    %33 = arith.addf %31, %32 : vector<1x1xf32>
    %34 = math.rsqrt %33 : vector<1x1xf32>
    %35 = vector.broadcast %34 : vector<1x1xf32> to vector<8x1xf32>
    %36 = arith.mulf %35, %5 : vector<8x1xf32>
    %37 = vector.broadcast %36 : vector<8x1xf32> to vector<8x8xf32>
    %38 = arith.mulf %24, %37 : vector<8x8xf32>
    %39 = vector.broadcast %7 : vector<8x1xf32> to vector<8x8xf32>
    %40 = arith.addf %38, %39 : vector<8x8xf32>
    %cst_21 = arith.constant 1.41421354 : f32
    %41 = vector.broadcast %cst_21 : f32 to vector<8x8xf32>
    %42 = arith.mulf %40, %41 : vector<8x8xf32>
    %43 = math.erf %42 : vector<8x8xf32>
    %cst_22 = arith.constant 1.000000e+00 : f32
    %44 = vector.broadcast %cst_22 : f32 to vector<8x8xf32>
    %45 = arith.addf %44, %43 : vector<8x8xf32>
    %46 = arith.mulf %40, %45 : vector<8x8xf32>
    %c0_23 = arith.constant 0 : index
    %c0_24 = arith.constant 0 : index
    %c0_25 = arith.constant 0 : index
    %47 = vector.load %arg5[%c0_23, %c0_24, %c0_25] : memref<1x8x8xf32, #tpu.memory_space<vmem>>, vector<1x8x8xf32>
    %48 = vector.shape_cast %47 : vector<1x8x8xf32> to vector<8x8xf32>
    %49 = vector.shape_cast %46 : vector<8x8xf32> to vector<1x8x8xf32>
    tpu.vector_store %arg5[%c0_23, %c0_24, %c0_25], %49 {strides = array<i32>} : memref<1x8x8xf32, #tpu.memory_space<vmem>>, vector<1x8x8xf32>,
    return
  }
  func.func @transform_0(%arg0: i32) -> (i32, i32, i32) {
    %c0_i32 = arith.constant 0 : i32
    %c0_i32_0 = arith.constant 0 : i32
    %c0_i32_1 = arith.constant 0 : i32
    return %arg0, %c0_i32, %c0_i32_0 : i32, i32, i32
  }
  func.func @transform_1(%arg0: i32) -> (i32, i32) {
    %c0_i32 = arith.constant 0 : i32
    %c0_i32_0 = arith.constant 0 : i32
    %c0_i32_1 = arith.constant 0 : i32
    return %c0_i32, %c0_i32_0 : i32, i32
  }
  func.func @transform_2(%arg0: i32) -> (i32, i32) {
    %c0_i32 = arith.constant 0 : i32
    %c0_i32_0 = arith.constant 0 : i32
    %c0_i32_1 = arith.constant 0 : i32
    return %c0_i32, %c0_i32_0 : i32, i32
  }
  func.func @transform_3(%arg0: i32) -> (i32, i32, i32) {
    %c0_i32 = arith.constant 0 : i32
    %c0_i32_0 = arith.constant 0 : i32
    %c0_i32_1 = arith.constant 0 : i32
    %c0_i32_2 = arith.constant 0 : i32
    return %c0_i32, %c0_i32_0, %c0_i32_1 : i32, i32, i32
  }
  func.func @transform_4(%arg0: i32) -> (i32, i32, i32) {
    %c0_i32 = arith.constant 0 : i32
    %c0_i32_0 = arith.constant 0 : i32
    %c0_i32_1 = arith.constant 0 : i32
    return %arg0, %c0_i32, %c0_i32_0 : i32, i32, i32
  }
}

</mosaic_0001>

<bundles_post_ra>
// kernel: tpu_custom_call.1
= control target key start
LH: loop header
LB: loop body
LE: loop exit
PB: predicated region body
PF: predicated region fallthrough
CT: control target
= control target key end

     0   :  { %9 = vsyncpa [#allocation3], 0  ;;  %s752_s0 = inlined_call_operand.vmem [shape: f32[2,8,9], index: 0, kind: input, shape index: {}]   ;;  %s753_s1 = inlined_call_operand.vmem [shape: f32[8,8], index: 1, kind: input, shape index: {}]   ;;  %s754_s2 = inlined_call_operand.vmem [shape: f32[8,4], index: 2, kind: input, shape index: {}]   ;;  %s755_s3 = inlined_call_operand.vmem [shape: f32[3,8,1], index: 3, kind: input, shape index: {}]   ;;  %s756_s4 = inlined_call_operand.hbm [shape: f32[2,8,8], index: 4, kind: output, shape index: {}]  }
   0x1   :  { %11 = vsyncpa [#allocation3 + $0x1], 0  ;;  %s646_s15 = smov 0   ;;  %s648_s16 = smov 0  }
   0x2   :  { %s650_s17 = smov 0   ;;  %s652_s18 = smov 0  }
   0x3 LB: > { %s667_s19 = sadd.s32 4294967295, %s614_s18   ;;  %s476_s20 = sadd.s32 4294967294, %s614_s18   ;;  %s614_s18 = sphi %s652_s18, %s762_s18   ;;  %s610_s17 = sphi %s650_s17, %s761_s17   ;;  %s606_s16 = sphi %s648_s16, %s760_s16   ;;  %s602_s15 = sphi %s646_s15, %s759_s15  }
   0x4   : > { %s671_s21 = sadd.s32 1, %s614_s18   ;;  %s113_s22 = sadd.s32 1, %s610_s17 }
   0x5   : > { %s110_s23 = ssub.s32 %s614_s18, %s671_s21  ;;  %p123_p0 = scmp.ne.s32.totalorder %s610_s17, %s606_s16 }
   0x6   : > { %p111_p1 = scmp.eq.s32.totalorder %s110_s23, 0  ;;  %p124_p2 = scmp.eq.s32.totalorder %s667_s19, 1 }
   0x7   : > { %p129_p3 = scmp.ne.s32.totalorder %s606_s16, %s602_s15  ;;  %p130_p4 = scmp.eq.s32.totalorder %s476_s20, 1 }
   0x8   : > { %s682_s24 = scalar_select %p111_p1, %s610_s17, %s113_s22  }
   0x9   : > { %p684_p5 = por %p124_p2, %p123_p0  ;;  %p688_p6 = por %p130_p4, %p129_p3 }
   0xa   : > { %p479_p7 = scmp.ge.s32.totalorder %s614_s18, 1  ;;  %p164_p8 = scmp.lt.s32.totalorder %s614_s18, 3 }
   0xc   : > { %p165_p9 = pnand %p479_p7, %p164_p8 }
   0xd   : > { %p189_p10 = scmp.lt.s32.totalorder (!%p165_p9), %s667_s19, 1  ;;  %s619_s8 = smov (!%p165_p9), 127  }
   0xe   : > { %168 = sbr.rel (%p165_p9) target bundleno = 826 (0x33a), region = 36  ;;  %s186_s23 = sand.u32 (!%p165_p9), 1, %s606_s16  }
   0xf   : > { %s620_s10 = smov (!%p165_p9), [#allocation2]  }
  0x10   : > { %s558_s11 = sshll.u32 (!%p165_p9), %s620_s10, 4  ;;  %s559_s11 = int_to_ptr.vmem [resolvable:$false] %s558_s11 }
  0x13   : > { %v616_v0 = vmov 0.0   ;;  %vm617_vm0 = vmmov 0   ;;  %s190_s27 = scalar_select %p189_p10, %s667_s19, 1  ;;  %v618_v1 = vmov 0   ;;  %v193_v2 = vld [vmem:[%s753_s1] sm:$0xff]  ;;  %vm281_vm1 = vcmask 64512  }
  0x14   : > { %500 = vmatprep.subr.mxu1 %v616_v0  ;;  %502 = vmatprep.mubr.msk.f32.mxu1 %vm617_vm0, %v616_v0  ;;  %v195_v4 = vld [vmem:[%s755_s3] sm:$0xff]  ;;  %v483_v5 = vld [vmem:[%s755_s3 + $0x10] sm:$0xff]  ;;  %vm208_vm2 = vcmask 1043456   ;;  %vm204_vm3 = vcmask 31744   ;;  %v482_v36 = vld [vmem:[%s755_s3 + $0x8] sm:$0xff] }
  0x15   : > { %495 = vmatprep.subr.mxu0 %v616_v0  ;;  %497 = vmatprep.mubr.msk.f32.mxu0 %vm617_vm0, %v616_v0  ;;  %s481_s28 = sshll.u32 %s190_s27, 3  ;;  %v194_v6 = vld [vmem:[%s754_s2] sm:$0xff]  ;;  %s480_s27 = sshll.u32 %s186_s23, 3 }
  0x16   : > { %548 = vset.pattern.permute.xlu0 %v618_v1  ;;  %549 = vset.pattern.permute.xlu1 %v618_v1  ;;  %s192_s5 = scalar_lea.vmem %s752_s0, %s481_s28  ;;  %s488_s28 = sshll.u32 %s667_s19, 7 }
  0x17   : > { %v200_v3 = vld [vmem:[%s192_s5] sm:$0xff]  ;;  %s188_s29 = scalar_lea.vmem [#allocation2], %s480_s27  ;;  %s415_s7 = scalar_lea.hbm %s756_s4, %s488_s28 }
  0x18   : > { %202 = vrot.lane.b32.xlu0 %v200_v3, %s619_s8  ;;  %501 = vmatpush3.msra.mxu1 %v200_v3  ;;  %s417_s30 = sshll.u32 %s188_s29, 4  ;;  %s404_s8 = scalar_lea.sflag [#allocation3], %s186_s23  ;;  %s418_s30 = int_to_ptr.vmem [resolvable:$true] %s417_s30 }
  0x19   : > { %503 = vmatmul.mubr.msk.f32.vlgmr.msra.gmra.mxu1 %vm281_vm1, %v193_v2  ;;  %s554_s9 = scalar_lea.vmem %s418_s30, 128  ;;  %s560_s19 = scalar_lea.vmem %s559_s11, 256 }
  0x1a   : > { %p555_p11 = scmp.ne.s32.totalorder %s418_s30, %s554_s9  ;;  %p561_p0 = scmp.lt.s32.totalorder %s418_s30, %s559_s11 }
  0x1b   : > { %p562_p1 = scmp.lt.s32.totalorder %s560_s19, %s554_s9 }
  0x1c   : > { %357 = vperm.xlu0 %548, %v195_v4   ;;  %p556_p12 = pnand %p555_p11, %p684_p5 }
  0x1d   : > { %p563_p2 = por %p562_p1, %p561_p0 }
  0x1e   : > { %p557_p13 = pneg %p556_p12 }
  0x20   : > { %394 = vperm.xlu0 %548, %v483_v5   ;;  %p564_p3 = pnand %p563_p2, %p557_p13 }
  0x8a   : > { %v203_v7 = vpop.permute.xlu0 %202 }
  0x8b   : > { %496 = vmatpush3.msk.msra.mxu0 %vm208_vm2, %v203_v7 }
  0x8c   : > { %498 = vmatmul.mubr.msk.f32.vlgmr.msra.gmra.mxu0 %vm204_vm3, %v194_v6 }
  0x97   : > { %v358_v12 = vpop.permute.xlu0 %357 }
  0x9b   : > { %v395_v41 = vpop.permute.xlu0 %394 }
  0xd9   : > { %v351_v8 = vpop.f32.mrf.mxu1 }
  0xdb   : > { %v504_v9 = vpop.f32.mrf.mxu1 }
 0x14c   : > { %v277_v10 = vpop.f32.mrf.mxu0 }
 0x14d   : > { %v352_v11 = vadd.f32 %v351_v8, %v277_v10 }
 0x14e   : > { %v499_v13 = vpop.f32.mrf.mxu0 }
 0x14f   : > { %v360_v14 = vadd.f32 %v358_v12, %v352_v11 }
 0x151   : > { %v361_v15 = vsel %vm281_vm1, %v360_v14, 0.0 }
 0x152   : > { %362 = vadd.xlane.f32.xlu1 %v361_v15 }
 0x1db   : > { %v363_v16 = vpop.xlane.xlu1 %362 }
 0x1dc   : > { %v364_v17 = vrot.slane %v363_v16, 4 }
 0x1de   : > { %v365_v18 = vadd.f32 %v364_v17, %v363_v16 }
 0x1e0   : > { %v366_v19 = vrot.slane %v365_v18, 2 }
 0x1e2   : > { %v367_v20 = vadd.f32 %v366_v19, %v365_v18 }
 0x1e4   : > { %v368_v21 = vrot.slane %v367_v20, 1 }
 0x1e6   : > { %v369_v22 = vadd.f32 %v368_v21, %v367_v20 }
 0x1e8   : > { %v370_v23 = vmul.f32 0.015625, %v369_v22 }
 0x1ea   : > { %v371_v24 = vsub.f32 %v360_v14, %v370_v23 }
 0x1ec   : > { %v372_v25 = vmul.f32 %v371_v24, %v371_v24 }
 0x1ee   : > { %v373_v26 = vsel %vm281_vm1, %v372_v25, 0.0 }
 0x1ef   : > { %374 = vadd.xlane.f32.xlu1 %v373_v26 }
 0x278   : > { %v375_v27 = vpop.xlane.xlu1 %374 }
 0x279   : > { %v376_v28 = vrot.slane %v375_v27, 4 }
 0x27b   : > { %v377_v29 = vadd.f32 %v376_v28, %v375_v27 }
 0x27d   : > { %v378_v30 = vrot.slane %v377_v29, 2 }
 0x27f   : > { %v379_v31 = vadd.f32 %v378_v30, %v377_v29 }
 0x281   : > { %v380_v32 = vrot.slane %v379_v31, 1 }
 0x283   : > { %v381_v33 = vadd.f32 %v380_v32, %v379_v31 }
 0x285   : > { %v382_v34 = vmul.f32 0.015625, %v381_v33 }
 0x287   : > { %v383_v35 = vadd.f32 1e-05, %v382_v34 }
 0x289   : > { %550 = vrsqrt.f32 %v383_v35 }
 0x296   : > { %v551_v37 = vpop.eup %550 }
 0x297   : > { %v385_v38 = vmul.f32 %v551_v37, %v482_v36 }
 0x299   : > { %388 = vperm.xlu1 %549, %v385_v38  }
 0x314   : > { %v389_v39 = vpop.permute.xlu1 %388 }
 0x315   : > { %v391_v40 = vmul.f32 %v389_v39, %v371_v24 }
 0x317   : > { %v397_v42 = vadd.f32 %v395_v41, %v391_v40 }
 0x319   : > { %v398_v43 = vmul.f32 1.4142135, %v397_v42 }
 0x31b   : > { %552 = verf.f32 %v398_v43 }
 0x328   : > { %v553_v44 = vpop.eup %552 }
 0x329   : > { %v400_v45 = vadd.f32 1.0, %v553_v44 }
 0x32b   : > { %v401_v46 = vmul.f32 %v400_v45, %v397_v42 }
 0x32d   : > { %402 = vst.msk [vmem:[%s188_s29] sm:$0xff] %vm281_vm1, %v401_v46 }
 0x32e   : > { %567 = shalt.err (!%p564_p3)
}
 0x32f   : > { %s568_s12 = scalar_lea.hbm %s415_s7, 128  ;;  %s572_s20 = scalar_lea.hbm %s756_s4, 256 }
 0x330   : > { %p569_p4 = scmp.ne.s32.totalorder %s415_s7, %s568_s12  ;;  %p573_p9 = scmp.lt.s32.totalorder %s415_s7, %s756_s4 }
 0x331   : > { %p574_p10 = scmp.lt.s32.totalorder %s572_s20, %s568_s12 }
 0x332   : > { %p570_p7 = pnand %p569_p4, %p684_p5 }
 0x333   : > { %p575_p11 = por %p574_p10, %p573_p9 }
 0x334   : > { %p571_p8 = pneg %p570_p7 }
 0x336   : > { %p576_p12 = pnand %p575_p11, %p571_p8 }
 0x338   : > { %579 = shalt.err (!%p576_p12)
}
 0x339   : > { %505 = dma.vmem_to_hbm [thread:$0]  (%p684_p5), %s418_s30, 128, %s415_s7, %s404_s8  }
 0x33a PF: > { %p511_p13 = scmp.ge.s32.totalorder %s614_s18, 2  ;;  %s429_s27 = sand.u32 1, %s602_s15  }
 0x33b   : > { %s430_s28 = scalar_lea.sflag [#allocation3], %s429_s27 }
 0x33c   : > { %p508_p0 = pnand %p511_p13, %p688_p6 }
 0x33e   : > { %p509_p1 = pneg %p508_p0 }
 0x340   : > { %597 = dma.done.wait (%p509_p1), %s430_s28, 128  }
 0x341   : > { %599 = vsyncadd (%p509_p1), %s430_s28, 4294967168  ;;  %p14_p2 = scmp.ge.s32.totalorder %s671_s21, 4   ;;  %s759_s15 = smov %s606_s16 }
 0x342   : > { %s760_s16 = smov %s610_s17  ;;  %s761_s17 = smov %s682_s24 }
 0x343   : > { %s762_s18 = smov %s671_s21  ;;  %16 = sbr.rel (!%p14_p2) target bundleno = 3 (0x3), region = 73 }
 0x348   :  { %435 = vsyncpa [#allocation3], 1 }
 0x349   :  { %437 = vsyncpa [#allocation3 + $0x1], 1 }

</bundles_post_ra>
